<compile_context>
chip_gen: v6e
topology: v6e:2x2x1
jax: 0.10.0
libtpu: 0.0.40
codegen_flags: <defaults>
</compile_context>

<pallas_src>
import functools

import jax
import jax.numpy as jnp
from jax import lax
from jax.experimental import pallas as pl
from jax.experimental.pallas import tpu as pltpu


def _round_up(x, m):
    return (x + m - 1) // m * m


def _pick_chunk(n):
    """Largest MXU-friendly chunk (multiple of 128) that divides n."""
    for c in (1024, 512, 256, 128):
        if n % c == 0:
            return c
    return n


def pop_kernel(seq_row_ref, seq_col_ref, poss_ref, out_ref, *, vpad, kb):
    """scores[n] = 1 / rank(poss[n]) for one lane-dense candidate block.

    rank(x) = 1 + #{k : count_k > count_x} + #{k < x : count_k == count_x}
    (stable descending-popularity rank; lower item id wins ties).
    """
    seq_row = seq_row_ref[...]            # (1, BLp)  int32, pad = -1
    seq_col = seq_col_ref[...]            # (BLp, 1)  int32, pad = -1
    poss = poss_ref[...]                  # (1, BMB)  int32, pad = -1
    blp = seq_row.shape[1]
    bmb = poss.shape[1]

    ones_row_bl = jnp.ones((1, blp), jnp.bfloat16)
    ones_col_bl = jnp.ones((blp, 1), jnp.bfloat16)
    ones_row_kb = jnp.ones((1, kb), jnp.bfloat16)

    # ---- candidate popularity: c_poss[n] = #{m : seq[m] == poss[n]}  (MXU) ---
    eq_mp = (seq_col == poss).astype(jnp.bfloat16)                   # (BLp, BMB)
    c_poss = jnp.dot(ones_row_bl, eq_mp,
                     preferred_element_type=jnp.float32)             # (1, BMB)

    # ---- rank accumulation over vocab chunks [k0, k0 + kb) ----
    n_chunks = vpad // kb

    def body(c, acc):
        k0 = c * kb
        # chunk bincount: c_k[k] = #{m : seq[m] == k0 + k}           (MXU)
        k_vs_seq = ((lax.broadcasted_iota(jnp.int32, (kb, blp), 0) + k0)
                    == seq_row).astype(jnp.bfloat16)                 # (kb, BLp)
        c_k = jnp.dot(k_vs_seq, ones_col_bl,
                      preferred_element_type=jnp.float32)            # (kb, 1)
        # fused "item k outranks candidate n" mask (single boolean mask)
        k_ids = lax.broadcasted_iota(jnp.int32, (kb, bmb), 0) + k0   # (kb, BMB)
        beats = (c_k > c_poss) | ((c_k == c_poss) & (k_ids < poss))  # (kb, BMB)
        # reduce over the chunk on the MXU
        return acc + jnp.dot(ones_row_kb, beats.astype(jnp.bfloat16),
                             preferred_element_type=jnp.float32)     # (1, BMB)

    n_beaten = lax.fori_loop(0, n_chunks, body,
                             jnp.zeros((1, bmb), jnp.float32))
    rank = n_beaten + 1.0                         # exact small integers (f32)
    out_ref[...] = pl.reciprocal(rank)            # exact divide (approx=False)


def pop_forward(input_seqs, poss_item_seqs, num_items):
    """POP forward pass as a single Pallas TPU kernel.

    Candidate ids are expected in [0, num_items] (the PyTorch module would
    raise for out-of-range ids).
    """
    B, L = input_seqs.shape
    Bp, M = poss_item_seqs.shape
    V = num_items + 1

    BL, BM = B * L, Bp * M
    BLp = _round_up(BL, 128)
    BMp = _round_up(BM, 128)
    Vpad = _round_up(V, 128)
    kb = _pick_chunk(Vpad)          # vocab chunk (contraction tile)
    bmb = _pick_chunk(BMp)          # candidate block (parallel grid axis)
    n_blocks = BMp // bmb

    # Layout plumbing stays in the wrapper: lane-dense rows padded with -1
    # (matches no item id), plus a column view of the history for the MXU.
    seq_flat = input_seqs.reshape(-1).astype(jnp.int32)
    poss_flat = poss_item_seqs.reshape(-1).astype(jnp.int32)
    seq_row = jnp.full((1, BLp), -1, jnp.int32).at[0, :BL].set(seq_flat)
    seq_col = seq_row.reshape(BLp, 1)
    poss_row = jnp.full((1, BMp), -1, jnp.int32).at[0, :BM].set(poss_flat)

    flops = int(2 * (BLp * BMp + n_blocks * Vpad * BLp + 2 * Vpad * BMp))
    bytes_accessed = int(4 * (2 * BLp * n_blocks + 2 * BMp))

    out_row = pl.pallas_call(
        functools.partial(pop_kernel, vpad=Vpad, kb=kb),
        out_shape=jax.ShapeDtypeStruct((1, BMp), jnp.float32),
        grid=(n_blocks,),
        in_specs=[
            pl.BlockSpec((1, BLp), lambda i: (0, 0)),   # seq_row (resident)
            pl.BlockSpec((BLp, 1), lambda i: (0, 0)),   # seq_col (resident)
            pl.BlockSpec((1, bmb), lambda i: (0, i)),   # candidate block
        ],
        out_specs=pl.BlockSpec((1, bmb), lambda i: (0, i)),
        compiler_params=pltpu.CompilerParams(
            dimension_semantics=("parallel",),          # 2 TCs on v7x
            vmem_limit_bytes=32 * 1024 * 1024),
        cost_estimate=pl.CostEstimate(
            flops=flops, transcendentals=0, bytes_accessed=bytes_accessed),
    )(seq_row, seq_col, poss_row)

    return out_row[0, :BM].reshape(Bp, M)


def pop_reference(input_seqs, poss_item_seqs, num_items):
    """Pure-JAX reference mirroring the PyTorch module (stable tie-break)."""
    V = num_items + 1
    counts = jnp.bincount(input_seqs.flatten(), length=V).astype(jnp.float32)
    sorted_items = jnp.argsort(-counts)                 # stable by default
    rank = jnp.zeros((V,), jnp.float32).at[sorted_items].set(
        jnp.arange(1, V + 1, dtype=jnp.float32))
    return 1.0 / rank[poss_item_seqs]


if __name__ == "__main__":
    num_items = 32            # valid item ids: 0 (pad) .. 32
    B, L, M = 2, 8, 5

    key = jax.random.PRNGKey(0)
    k1, k2 = jax.random.split(key)
    input_seqs = jax.random.randint(k1, (B, L), 1, num_items + 1, dtype=jnp.int32)
    poss_item_seqs = jax.random.randint(k2, (B, M), 1, num_items + 1, dtype=jnp.int32)

    out = jax.block_until_ready(pop_forward(input_seqs, poss_item_seqs, num_items))
    ref = pop_reference(input_seqs, poss_item_seqs, num_items)

    assert out.shape == (B, M) and out.dtype == jnp.float32
    assert jnp.allclose(out, ref, atol=1e-6), (out, ref)
    print("KERNEL_OK")
</pallas_src>

<mosaic_0001>
module attributes {stable_mosaic.version = 11 : i64} {
  func.func @pop_kernel(%arg0: i32, %arg1: memref<1x128xi32, #tpu.memory_space<vmem>>, %arg2: memref<128x1xi32, #tpu.memory_space<vmem>>, %arg3: memref<1x128xi32, #tpu.memory_space<vmem>>, %arg4: memref<1x128xf32, #tpu.memory_space<vmem>>) attributes {dimension_semantics = [#tpu.dimension_semantics<parallel>], iteration_bounds = array<i64: 1>, scalar_prefetch = 0 : i64, scratch_operands = 0 : i64, tpu.core_type = #tpu.core_type<tc>, window_params = [{pipeline_mode = #tpu.pipeline_mode<synchronous>, transform_indices = @transform_0, window_bounds = array<i64: 1, 128>}, {pipeline_mode = #tpu.pipeline_mode<synchronous>, transform_indices = @transform_1, window_bounds = array<i64: 128, 1>}, {transform_indices = @transform_2, window_bounds = array<i64: 1, 128>}, {transform_indices = @transform_3, window_bounds = array<i64: 1, 128>}]} {
    %c0 = arith.constant 0 : index
    %c0_0 = arith.constant 0 : index
    %0 = vector.load %arg1[%c0, %c0_0] : memref<1x128xi32, #tpu.memory_space<vmem>>, vector<1x128xi32>
    %c0_1 = arith.constant 0 : index
    %c0_2 = arith.constant 0 : index
    %1 = vector.load %arg2[%c0_1, %c0_2] : memref<128x1xi32, #tpu.memory_space<vmem>>, vector<128x1xi32>
    %c0_3 = arith.constant 0 : index
    %c0_4 = arith.constant 0 : index
    %2 = vector.load %arg3[%c0_3, %c0_4] : memref<1x128xi32, #tpu.memory_space<vmem>>, vector<1x128xi32>
    %cst = arith.constant 1.000000e+00 : bf16
    %3 = vector.broadcast %cst : bf16 to vector<1x128xbf16>
    %cst_5 = arith.constant 1.000000e+00 : bf16
    %4 = vector.broadcast %cst_5 : bf16 to vector<128x1xbf16>
    %cst_6 = arith.constant 1.000000e+00 : bf16
    %5 = vector.broadcast %cst_6 : bf16 to vector<1x128xbf16>
    %6 = vector.broadcast %1 : vector<128x1xi32> to vector<128x128xi32>
    %7 = vector.broadcast %2 : vector<1x128xi32> to vector<128x128xi32>
    %8 = arith.cmpi eq, %6, %7 : vector<128x128xi32>
    %9 = arith.extui %8 : vector<128x128xi1> to vector<128x128xi32>
    %10 = arith.sitofp %9 : vector<128x128xi32> to vector<128x128xf32>
    %11 = arith.truncf %10 : vector<128x128xf32> to vector<128x128xbf16>
    %cst_7 = arith.constant dense<0.000000e+00> : vector<1x128xf32>
    %12 = tpu.matmul %3, %11, %cst_7 {dimension_numbers = #tpu.dot_dimension_numbers<[1], [0], [0], [1], [0, 0, 1, 1], [], []>} : vector<1x128xbf16>, vector<128x128xbf16>, vector<1x128xf32> -> vector<1x128xf32>
    %cst_8 = arith.constant 0.000000e+00 : f32
    %13 = vector.broadcast %cst_8 : f32 to vector<1x128xf32>
    %c0_i32 = arith.constant 0 : i32
    %c128_i32 = arith.constant 128 : i32
    %14 = arith.muli %c0_i32, %c128_i32 : i32
    %15 = tpu.iota {dimensions = array<i32: 0>} : vector<128x128xi32>
    %16 = vector.broadcast %14 : i32 to vector<128x128xi32>
    %17 = arith.addi %15, %16 : vector<128x128xi32>
    %18 = vector.broadcast %0 : vector<1x128xi32> to vector<128x128xi32>
    %19 = arith.cmpi eq, %17, %18 : vector<128x128xi32>
    %20 = arith.extui %19 : vector<128x128xi1> to vector<128x128xi32>
    %21 = arith.sitofp %20 : vector<128x128xi32> to vector<128x128xf32>
    %22 = arith.truncf %21 : vector<128x128xf32> to vector<128x128xbf16>
    %cst_9 = arith.constant dense<0.000000e+00> : vector<128x1xf32>
    %23 = tpu.matmul %22, %4, %cst_9 {dimension_numbers = #tpu.dot_dimension_numbers<[1], [0], [0], [1], [0, 0, 1, 1], [], []>} : vector<128x128xbf16>, vector<128x1xbf16>, vector<128x1xf32> -> vector<128x1xf32>
    %24 = tpu.iota {dimensions = array<i32: 0>} : vector<128x128xi32>
    %25 = vector.broadcast %14 : i32 to vector<128x128xi32>
    %26 = arith.addi %24, %25 : vector<128x128xi32>
    %27 = vector.broadcast %23 : vector<128x1xf32> to vector<128x128xf32>
    %28 = vector.broadcast %12 : vector<1x128xf32> to vector<128x128xf32>
    %29 = arith.cmpf ogt, %27, %28 : vector<128x128xf32>
    %30 = vector.broadcast %23 : vector<128x1xf32> to vector<128x128xf32>
    %31 = vector.broadcast %12 : vector<1x128xf32> to vector<128x128xf32>
    %32 = arith.cmpf oeq, %30, %31 : vector<128x128xf32>
    %33 = vector.broadcast %2 : vector<1x128xi32> to vector<128x128xi32>
    %34 = arith.cmpi slt, %26, %33 : vector<128x128xi32>
    %35 = arith.andi %32, %34 : vector<128x128xi1>
    %36 = arith.ori %29, %35 : vector<128x128xi1>
    %37 = arith.extui %36 : vector<128x128xi1> to vector<128x128xi32>
    %38 = arith.sitofp %37 : vector<128x128xi32> to vector<128x128xf32>
    %39 = arith.truncf %38 : vector<128x128xf32> to vector<128x128xbf16>
    %cst_10 = arith.constant dense<0.000000e+00> : vector<1x128xf32>
    %40 = tpu.matmul %5, %39, %cst_10 {dimension_numbers = #tpu.dot_dimension_numbers<[1], [0], [0], [1], [0, 0, 1, 1], [], []>} : vector<1x128xbf16>, vector<128x128xbf16>, vector<1x128xf32> -> vector<1x128xf32>
    %41 = arith.addf %13, %40 : vector<1x128xf32>
    %c1_i32 = arith.constant 1 : i32
    %cst_11 = arith.constant 1.000000e+00 : f32
    %42 = vector.broadcast %cst_11 : f32 to vector<1x128xf32>
    %43 = arith.addf %41, %42 : vector<1x128xf32>
    %44 = tpu.reciprocal %43 : vector<1x128xf32> -> vector<1x128xf32>
    %c0_12 = arith.constant 0 : index
    %c0_13 = arith.constant 0 : index
    %45 = vector.load %arg4[%c0_12, %c0_13] : memref<1x128xf32, #tpu.memory_space<vmem>>, vector<1x128xf32>
    tpu.vector_store %arg4[%c0_12, %c0_13], %44 {strides = array<i32>} : memref<1x128xf32, #tpu.memory_space<vmem>>, vector<1x128xf32>,
    return
  }
  func.func @transform_0(%arg0: i32) -> (i32, i32) {
    %c0_i32 = arith.constant 0 : i32
    %c0_i32_0 = arith.constant 0 : i32
    %c0_i32_1 = arith.constant 0 : i32
    return %c0_i32, %c0_i32_0 : i32, i32
  }
  func.func @transform_1(%arg0: i32) -> (i32, i32) {
    %c0_i32 = arith.constant 0 : i32
    %c0_i32_0 = arith.constant 0 : i32
    %c0_i32_1 = arith.constant 0 : i32
    return %c0_i32, %c0_i32_0 : i32, i32
  }
  func.func @transform_2(%arg0: i32) -> (i32, i32) {
    %c0_i32 = arith.constant 0 : i32
    %c0_i32_0 = arith.constant 0 : i32
    return %c0_i32, %arg0 : i32, i32
  }
  func.func @transform_3(%arg0: i32) -> (i32, i32) {
    %c0_i32 = arith.constant 0 : i32
    %c0_i32_0 = arith.constant 0 : i32
    return %c0_i32, %arg0 : i32, i32
  }
}

</mosaic_0001>

<bundles_post_ra>
// kernel: tpu_custom_call.1
= control target key start
LH: loop header
LB: loop body
LE: loop exit
PB: predicated region body
PF: predicated region fallthrough
CT: control target
= control target key end

     0   :  { %v183_v2 = vlaneseq  ;;  %v853_v3 = vmov 1065369472   ;;  %v854_v4 = vmov 0   ;;  %v855_v9 = vmov 0.0   ;;  %s1206_s0 = inlined_call_operand.vmem [shape: s32[1,128], index: 0, kind: input, shape index: {}]   ;;  %s1207_s1 = inlined_call_operand.vmem [shape: s32[128,1], index: 1, kind: input, shape index: {}]   ;;  %s1208_s2 = inlined_call_operand.vmem [shape: s32[1,128], index: 2, kind: input, shape index: {}]   ;;  %s1209_s3 = inlined_call_operand.hbm [shape: f32[1,128], index: 3, kind: output, shape index: {}]  }
   0x1   :  { %v32_v0 = vld [vmem:[%s1207_s1 + $0x70] sm:$0xff]  ;;  %v30_v1 = vld [vmem:[%s1207_s1 + $0x60] sm:$0xff]  ;;  %769 = vmatprep.subr.bf16.mxu1 %v853_v3  ;;  %828 = vset.pattern.permute.xlu1 %v854_v4  ;;  %v33_v6 = vld [vmem:[%s1207_s1 + $0x78] sm:$0xff] }
   0x2   :  { %827 = vset.pattern.permute.xlu0 %v854_v4  ;;  %770 = vmatpush3.bf16.msra.mxu1 %v853_v3  ;;  %v887_v5 = vshrl.u32 %v183_v2, 7  ;;  %v31_v7 = vld [vmem:[%s1207_s1 + $0x68] sm:$0xff]  ;;  %v903_v10 = vld [vmem:[%s1206_s0] ss:$0 sm:$0xff] }
   0x3   :  { %78 = vperm.xlu0 %827, %v32_v0   ;;  %72 = vperm.xlu1 %828, %v30_v1  }
   0x4   :  { %771 = vmatprep.subr.bf16.mxu1 %v853_v3  ;;  %v897_v8 = vadd.s32 8, %v887_v5  ;;  %749 = vmatprep.subr.bf16.mxu0 %v855_v9  ;;  %vm204_vm0 = vcmp.eq.s32.totalorder %v887_v5, %v903_v10 }
   0x6   :  { %772 = vmatpush3.bf16.msra.mxu1 %v853_v3  ;;  %vm205_vm1 = vcmp.eq.s32.totalorder %v897_v8, %v903_v10 }
   0x7   :  { %8 = vsyncpa [#allocation3], 0  ;;  %81 = vperm.xlu0 %827, %v33_v6   ;;  %75 = vperm.xlu1 %828, %v31_v7   ;;  %v29_v11 = vld [vmem:[%s1207_s1 + $0x58] sm:$0xff]  ;;  %v28_v12 = vld [vmem:[%s1207_s1 + $0x50] sm:$0xff]  ;;  %v856_v13 = vmov 1.0|1.0  }
   0x8   :  { %vm667_vm2 = vmpackc.low %vm205_vm1, %vm204_vm0  ;;  %773 = vmatprep.subr.bf16.mxu1 %v853_v3  ;;  %v27_v14 = vld [vmem:[%s1207_s1 + $0x48] sm:$0xff]  ;;  %v26_v15 = vld [vmem:[%s1207_s1 + $0x40] sm:$0xff]  ;;  %v944_v20 = vadd.s32 16, %v887_v5  ;;  %v947_v21 = vadd.s32 24, %v887_v5  ;;  %v957_v24 = vadd.s32 32, %v887_v5  ;;  %v960_v25 = vadd.s32 40, %v887_v5 }
   0x9   :  { %785 = vmatprep.mubr.msk.bf16.mxu1 %vm667_vm2, %v856_v13  ;;  %v25_v16 = vld [vmem:[%s1207_s1 + $0x38] sm:$0xff]  ;;  %v24_v17 = vld [vmem:[%s1207_s1 + $0x30] sm:$0xff]  ;;  %v23_v18 = vld [vmem:[%s1207_s1 + $0x28] sm:$0xff]  ;;  %v980_v28 = vadd.s32 48, %v887_v5  ;;  %v983_v29 = vadd.s32 56, %v887_v5  ;;  %v986_v30 = vadd.s32 64, %v887_v5 }
   0xa   :  { %774 = vmatpush3.bf16.msra.mxu1 %v853_v3  ;;  %v22_v19 = vld [vmem:[%s1207_s1 + $0x20] sm:$0xff]  ;;  %v21_v22 = vld [vmem:[%s1207_s1 + $0x18] sm:$0xff]  ;;  %v20_v23 = vld [vmem:[%s1207_s1 + $0x10] sm:$0xff]  ;;  %vm206_vm3 = vcmp.eq.s32.totalorder %v944_v20, %v903_v10  ;;  %vm207_vm4 = vcmp.eq.s32.totalorder %v947_v21, %v903_v10  ;;  %vm208_vm5 = vcmp.eq.s32.totalorder %v957_v24, %v903_v10  ;;  %vm209_vm6 = vcmp.eq.s32.totalorder %v960_v25, %v903_v10 }
   0xb   :  { %69 = vperm.xlu1 %828, %v29_v11   ;;  %66 = vperm.xlu0 %827, %v28_v12   ;;  %v19_v26 = vld [vmem:[%s1207_s1 + $0x8] sm:$0xff]  ;;  %v18_v27 = vld [vmem:[%s1207_s1] sm:$0xff]  ;;  %vm669_vm7 = vmpackc.low %vm207_vm4, %vm206_vm3  ;;  %v989_v31 = vadd.s32 72, %v887_v5  ;;  %vm857_vm9 = vmmov 0   ;;  %vm210_vm10 = vcmp.eq.s32.totalorder %v980_v28, %v903_v10  ;;  %vm211_vm11 = vcmp.eq.s32.totalorder %v983_v29, %v903_v10 }
   0xc   :  { %775 = vmatprep.subr.bf16.mxu1 %v853_v3  ;;  %vm671_vm8 = vmpackc.low %vm209_vm6, %vm208_vm5  ;;  %765 = vmatprep.mubr.msk.bf16.mxu0 %vm857_vm9, %v855_v9  ;;  %vm212_vm12 = vcmp.eq.s32.totalorder %v986_v30, %v903_v10  ;;  %v1004_v32 = vadd.s32 80, %v887_v5  ;;  %v1007_v33 = vadd.s32 88, %v887_v5  ;;  %v1010_v34 = vadd.s32 96, %v887_v5  ;;  %v1041_v38 = vld [vmem:[%s1208_s2] ss:$0 sm:$0xff]  ;;  %s858_s2 = smov [#allocation2]  }
   0xd   :  { %vm213_vm13 = vcmp.eq.s32.totalorder %v989_v31, %v903_v10  ;;  %vm673_vm14 = vmpackc.low %vm211_vm11, %vm210_vm10  ;;  %v1013_v35 = vadd.s32 104, %v887_v5  ;;  %v1026_v36 = vadd.s32 112, %v887_v5  ;;  %v1029_v37 = vadd.s32 120, %v887_v5  ;;  %s609_s19 = sshll.u32 %s858_s2, 4  ;;  %s610_s19 = int_to_ptr.vmem [resolvable:$true] %s609_s19 }
   0xe   :  { %776 = vmatpush3.bf16.msra.mxu1 %v853_v3  ;;  %vm675_vm15 = vmpackc.low %vm213_vm13, %vm212_vm12  ;;  %vm214_vm0 = vcmp.eq.s32.totalorder %v1004_v32, %v903_v10  ;;  %vm215_vm1 = vcmp.eq.s32.totalorder %v1007_v33, %v903_v10  ;;  %vm216_vm2 = vcmp.eq.s32.totalorder %v1010_v34, %v903_v10  ;;  %s831_s20 = scalar_lea.vmem %s610_s19, 16  ;;  %s835_s21 = scalar_lea.vmem %s610_s19, 32 }
   0xf   :  { %63 = vperm.xlu1 %828, %v27_v14   ;;  %60 = vperm.xlu0 %827, %v26_v15   ;;  %vm217_vm3 = vcmp.eq.s32.totalorder %v1013_v35, %v903_v10  ;;  %vm677_vm4 = vmpackc.low %vm215_vm1, %vm214_vm0  ;;  %vm218_vm6 = vcmp.eq.s32.totalorder %v1026_v36, %v903_v10  ;;  %p832_p0 = scmp.ne.s32.totalorder %s610_s19, %s831_s20  ;;  %p836_p1 = scmp.lt.s32.totalorder %s610_s19, %s610_s19 }
  0x10   :  { %777 = vmatprep.subr.bf16.mxu1 %v853_v3  ;;  %vm679_vm5 = vmpackc.low %vm217_vm3, %vm216_vm2  ;;  %p837_p2 = scmp.lt.s32.totalorder %s835_s21, %s831_s20 }
  0x12   :  { %778 = vmatpush3.bf16.msra.mxu1 %v853_v3  ;;  %p838_p3 = por %p837_p2, %p836_p1 }
  0x13   :  { %57 = vperm.xlu1 %828, %v25_v16   ;;  %54 = vperm.xlu0 %827, %v24_v17   ;;  %v439_v16 = vsub.s32 0, %v887_v5 }
  0x14   :  { %779 = vmatprep.subr.bf16.mxu1 %v853_v3  ;;  %p839_p4 = pnand %p838_p3, %p832_p0 }
  0x16   :  { %780 = vmatpush3.bf16.msra.mxu1 %v853_v3 }
  0x17   :  { %51 = vperm.xlu1 %828, %v23_v18   ;;  %48 = vperm.xlu0 %827, %v22_v19  }
  0x18   :  { %781 = vmatprep.subr.bf16.mxu1 %v853_v3 }
  0x1a   :  { %782 = vmatpush3.bf16.msra.mxu1 %v853_v3 }
  0x1b   :  { %45 = vperm.xlu1 %828, %v21_v22   ;;  %42 = vperm.xlu0 %827, %v20_v23  }
  0x1c   :  { %783 = vmatprep.subr.bf16.mxu1 %v853_v3 }
  0x1e   :  { %784 = vmatpush3.bf16.msra.mxu1 %v853_v3 }
  0x1f   :  { %39 = vperm.xlu1 %828, %v19_v26   ;;  %36 = vperm.xlu0 %827, %v18_v27  }
  0x21   :  { %786 = vmatmul.mubr.msk.bf16.vlgmr.msra.gmra.mxu1 %vm669_vm7, %v856_v13  ;;  %vm219_vm7 = vcmp.eq.s32.totalorder %v1029_v37, %v903_v10 }
  0x22   :  { %789 = vmatprep.mubr.msk.bf16.mxu1 %vm671_vm8, %v856_v13  ;;  %vm681_vm8 = vmpackc.low %vm219_vm7, %vm218_vm6 }
  0x29   :  { %790 = vmatmul.mubr.msk.bf16.gmra.mxu1 %vm673_vm14, %v856_v13 }
  0x2a   :  { %793 = vmatprep.mubr.msk.bf16.mxu1 %vm675_vm15, %v856_v13 }
  0x31   :  { %794 = vmatmul.mubr.msk.bf16.gmra.mxu1 %vm677_vm4, %v856_v13 }
  0x32   :  { %797 = vmatprep.mubr.msk.bf16.mxu1 %vm679_vm5, %v856_v13 }
  0x39   :  { %798 = vmatmul.mubr.msk.bf16.gmra.mxu1 %vm681_vm8, %v856_v13 }
  0x7e   :  { %v79_v39 = vpop.permute.xlu0 %78  ;;  %v73_v40 = vpop.permute.xlu1 %72 }
  0x7f   :  { %vm101_vm10 = vcmp.eq.s32.totalorder %v79_v39, %v1041_v38  ;;  %vm99_vm11 = vcmp.eq.s32.totalorder %v73_v40, %v1041_v38 }
  0x82   :  { %v82_v41 = vpop.permute.xlu0 %81  ;;  %v76_v42 = vpop.permute.xlu1 %75 }
  0x83   :  { %vm102_vm12 = vcmp.eq.s32.totalorder %v82_v41, %v1041_v38  ;;  %vm100_vm13 = vcmp.eq.s32.totalorder %v76_v42, %v1041_v38 }
  0x84   :  { %vm634_vm14 = vmpackc.low %vm102_vm12, %vm101_vm10 }
  0x85   :  { %750 = vmatpush3.bf16.msk.msra.mxu0 %vm634_vm14, %v856_v13  ;;  %vm636_vm15 = vmpackc.low %vm100_vm13, %vm99_vm11 }
  0x86   :  { %v70_v43 = vpop.permute.xlu1 %69  ;;  %v67_v44 = vpop.permute.xlu0 %66  ;;  %751 = vmatprep.subr.bf16.mxu0 %v855_v9 }
  0x87   :  { %vm98_vm0 = vcmp.eq.s32.totalorder %v70_v43, %v1041_v38  ;;  %vm97_vm1 = vcmp.eq.s32.totalorder %v67_v44, %v1041_v38 }
  0x88   :  { %vm638_vm2 = vmpackc.low %vm98_vm0, %vm97_vm1 }
  0x89   :  { %752 = vmatpush3.bf16.msk.msra.mxu0 %vm636_vm15, %v856_v13 }
  0x8a   :  { %v64_v45 = vpop.permute.xlu1 %63  ;;  %v61_v46 = vpop.permute.xlu0 %60  ;;  %753 = vmatprep.subr.bf16.mxu0 %v855_v9 }
  0x8b   :  { %vm96_vm3 = vcmp.eq.s32.totalorder %v64_v45, %v1041_v38  ;;  %vm95_vm4 = vcmp.eq.s32.totalorder %v61_v46, %v1041_v38 }
  0x8c   :  { %vm640_vm5 = vmpackc.low %vm96_vm3, %vm95_vm4 }
  0x8d   :  { %754 = vmatpush3.bf16.msk.msra.mxu0 %vm638_vm2, %v856_v13 }
  0x8e   :  { %v58_v47 = vpop.permute.xlu1 %57  ;;  %v55_v48 = vpop.permute.xlu0 %54  ;;  %755 = vmatprep.subr.bf16.mxu0 %v855_v9 }
  0x8f   :  { %vm94_vm6 = vcmp.eq.s32.totalorder %v58_v47, %v1041_v38  ;;  %vm93_vm7 = vcmp.eq.s32.totalorder %v55_v48, %v1041_v38 }
  0x90   :  { %vm642_vm8 = vmpackc.low %vm94_vm6, %vm93_vm7  ;;  %vm485_vm6 = vcmp.lt.s32.totalorder %v1010_v34, %v1041_v38 }
  0x91   :  { %756 = vmatpush3.bf16.msk.msra.mxu0 %vm640_vm5, %v856_v13 }
  0x92   :  { %v52_v49 = vpop.permute.xlu1 %51  ;;  %v49_v50 = vpop.permute.xlu0 %48  ;;  %757 = vmatprep.subr.bf16.mxu0 %v855_v9 }
  0x93   :  { %vm92_vm10 = vcmp.eq.s32.totalorder %v52_v49, %v1041_v38  ;;  %vm91_vm11 = vcmp.eq.s32.totalorder %v49_v50, %v1041_v38 }
  0x94   :  { %vm644_vm12 = vmpackc.low %vm92_vm10, %vm91_vm11  ;;  %vm488_vm11 = vcmp.lt.s32.totalorder %v1029_v37, %v1041_v38 }
  0x95   :  { %758 = vmatpush3.bf16.msk.msra.mxu0 %vm642_vm8, %v856_v13 }
  0x96   :  { %v46_v51 = vpop.permute.xlu1 %45  ;;  %v43_v52 = vpop.permute.xlu0 %42  ;;  %759 = vmatprep.subr.bf16.mxu0 %v855_v9 }
  0x97   :  { %vm90_vm13 = vcmp.eq.s32.totalorder %v46_v51, %v1041_v38  ;;  %vm89_vm14 = vcmp.eq.s32.totalorder %v43_v52, %v1041_v38 }
  0x98   :  { %vm646_vm15 = vmpackc.low %vm90_vm13, %vm89_vm14 }
  0x99   :  { %760 = vmatpush3.bf16.msk.msra.mxu0 %vm644_vm12, %v856_v13 }
  0x9a   :  { %v40_v53 = vpop.permute.xlu1 %39  ;;  %v37_v54 = vpop.permute.xlu0 %36  ;;  %761 = vmatprep.subr.bf16.mxu0 %v855_v9 }
  0x9b   :  { %vm88_vm0 = vcmp.eq.s32.totalorder %v40_v53, %v1041_v38  ;;  %vm87_vm1 = vcmp.eq.s32.totalorder %v37_v54, %v1041_v38 }
  0x9c   :  { %vm648_vm2 = vmpackc.low %vm88_vm0, %vm87_vm1  ;;  %vm483_vm1 = vcmp.lt.s32.totalorder %v1004_v32, %v1041_v38 }
  0x9d   :  { %762 = vmatpush3.bf16.msk.msra.mxu0 %vm646_vm15, %v856_v13 }
  0x9e   :  { %763 = vmatprep.subr.bf16.mxu0 %v855_v9 }
  0xa1   :  { %764 = vmatpush3.bf16.msk.msra.mxu0 %vm648_vm2, %v856_v13 }
  0xa2   :  { %801 = vmatprep.subr.bf16.mxu0 %v855_v9 }
  0xa4   :  { %766 = vmatmul.mubr.bf16.vlgmr.msra.gmra.mxu0 %v853_v3 }
  0xa5   :  { %817 = vmatprep.mubr.msk.bf16.mxu0 %vm857_vm9, %v855_v9  ;;  %vm487_vm9 = vcmp.lt.s32.totalorder %v1026_v36, %v1041_v38 }
  0xe1   :  { %v787_v55 = vpop.f32.mrf.mxu1 }
  0xe3   :  { %v294_v56 = vpop.f32.mrf.mxu1 }
  0xe5   :  { %v788_v57 = vpop.f32.mrf.mxu1 }
  0xe7   :  { %v297_v58 = vpop.f32.mrf.mxu1 }
  0xe9   :  { %v791_v59 = vpop.f32.mrf.mxu1 }
  0xeb   :  { %v310_v60 = vpop.f32.mrf.mxu1 }
  0xed   :  { %v792_v61 = vpop.f32.mrf.mxu1 }
  0xef   :  { %v313_v62 = vpop.f32.mrf.mxu1 }
  0xf1   :  { %v795_v63 = vpop.f32.mrf.mxu1 }
  0xf3   :  { %v326_v0 = vpop.f32.mrf.mxu1 }
  0xf5   :  { %v796_v1 = vpop.f32.mrf.mxu1 }
  0xf7   :  { %v329_v2 = vpop.f32.mrf.mxu1 }
  0xf9   :  { %v799_v4 = vpop.f32.mrf.mxu1 }
  0xfa   :  { %429 = vperm.xlu0 %827, %v799_v4  }
  0xfb   :  { %v342_v6 = vpop.f32.mrf.mxu1 }
  0xfd   :  { %v800_v7 = vpop.f32.mrf.mxu1 }
  0xfe   :  { %419 = vperm.xlu0 %827, %v342_v6   ;;  %434 = vperm.xlu1 %828, %v800_v7  }
  0xff   :  { %v345_v10 = vpop.f32.mrf.mxu1 }
 0x102   :  { %409 = vperm.xlu0 %827, %v795_v63   ;;  %424 = vperm.xlu1 %828, %v345_v10  }
 0x106   :  { %399 = vperm.xlu0 %827, %v326_v0   ;;  %414 = vperm.xlu1 %828, %v796_v1  }
 0x10a   :  { %389 = vperm.xlu0 %827, %v791_v59   ;;  %404 = vperm.xlu1 %828, %v329_v2  }
 0x10e   :  { %379 = vperm.xlu0 %827, %v310_v60   ;;  %394 = vperm.xlu1 %828, %v792_v61  }
 0x112   :  { %369 = vperm.xlu0 %827, %v787_v55   ;;  %384 = vperm.xlu1 %828, %v313_v62  }
 0x116   :  { %359 = vperm.xlu0 %827, %v294_v56   ;;  %374 = vperm.xlu1 %828, %v788_v57  }
 0x11a   :  { %364 = vperm.xlu1 %828, %v297_v58  }
 0x164   :  { %v177_v11 = vpop.f32.mrf.mxu0 }
 0x165   :  { %v1079_v17 = vrot.slane %v177_v11, %v439_v16 }
 0x166   :  { %v767_v12 = vpop.f32.mrf.mxu0 }
 0x168   :  { %v180_v14 = vpop.f32.mrf.mxu0 }
 0x16a   :  { %v768_v15 = vpop.f32.mrf.mxu0 }
 0x175   :  { %v430_v18 = vpop.permute.xlu0 %429 }
 0x176   :  { %vm471_vm3 = vcmp.eq.f32.partialorder %v430_v18, %v1079_v17  ;;  %vm455_vm4 = vcmp.gt.f32.partialorder %v430_v18, %v1079_v17 }
 0x177   :  { %vm503_vm5 = vmand %vm471_vm3, %vm487_vm9 }
 0x178   :  { %vm1087_vm7 = vmor %vm455_vm4, %vm503_vm5  ;;  %vm486_vm5 = vcmp.lt.s32.totalorder %v1013_v35, %v1041_v38 }
 0x179   :  { %v420_v19 = vpop.permute.xlu0 %419  ;;  %v435_v22 = vpop.permute.xlu1 %434 }
 0x17a   :  { %vm453_vm8 = vcmp.gt.f32.partialorder %v420_v19, %v1079_v17  ;;  %vm469_vm10 = vcmp.eq.f32.partialorder %v420_v19, %v1079_v17  ;;  %vm472_vm12 = vcmp.eq.f32.partialorder %v435_v22, %v1079_v17  ;;  %vm456_vm14 = vcmp.gt.f32.partialorder %v435_v22, %v1079_v17 }
 0x17b   :  { %vm501_vm13 = vmand %vm469_vm10, %vm485_vm6 }
 0x17c   :  { %vm1097_vm15 = vmor %vm453_vm8, %vm501_vm13 }
 0x17d   :  { %vm504_vm0 = vmand %vm472_vm12, %vm488_vm11  ;;  %v410_v27 = vpop.permute.xlu0 %409  ;;  %v425_v34 = vpop.permute.xlu1 %424 }
 0x17e   :  { %vm520_vm2 = vmor %vm456_vm14, %vm504_vm0  ;;  %vm451_vm9 = vcmp.gt.f32.partialorder %v410_v27, %v1079_v17  ;;  %vm467_vm3 = vcmp.eq.f32.partialorder %v410_v27, %v1079_v17  ;;  %vm470_vm6 = vcmp.eq.f32.partialorder %v425_v34, %v1079_v17  ;;  %vm454_vm10 = vcmp.gt.f32.partialorder %v425_v34, %v1079_v17 }
 0x17f   :  { %vm699_vm4 = vmpackc.low %vm520_vm2, %vm1087_vm7  ;;  %vm481_vm7 = vcmp.lt.s32.totalorder %v986_v30, %v1041_v38  ;;  %vm484_vm2 = vcmp.lt.s32.totalorder %v1007_v33, %v1041_v38 }
 0x180   :  { %vm499_vm8 = vmand %vm467_vm3, %vm483_vm1  ;;  %802 = vmatpush3.bf16.msk.msra.mxu0 %vm699_vm4, %v856_v13 }
 0x181   :  { %vm1112_vm11 = vmor %vm451_vm9, %vm499_vm8  ;;  %v400_v36 = vpop.permute.xlu0 %399  ;;  %803 = vmatprep.subr.bf16.mxu0 %v855_v9  ;;  %v415_v37 = vpop.permute.xlu1 %414 }
 0x182   :  { %vm502_vm12 = vmand %vm470_vm6, %vm486_vm5  ;;  %vm465_vm13 = vcmp.eq.f32.partialorder %v400_v36, %v1079_v17  ;;  %vm449_vm0 = vcmp.gt.f32.partialorder %v400_v36, %v1079_v17  ;;  %vm468_vm9 = vcmp.eq.f32.partialorder %v415_v37, %v1079_v17  ;;  %vm452_vm4 = vcmp.gt.f32.partialorder %v415_v37, %v1079_v17 }
 0x183   :  { %vm518_vm14 = vmor %vm454_vm10, %vm502_vm12 }
 0x184   :  { %vm701_vm1 = vmpackc.low %vm518_vm14, %vm1097_vm15  ;;  %vm479_vm15 = vcmp.lt.s32.totalorder %v980_v28, %v1041_v38 }
 0x185   :  { %vm497_vm3 = vmand %vm465_vm13, %vm481_vm7  ;;  %804 = vmatpush3.bf16.msk.msra.mxu0 %vm701_vm1, %v856_v13  ;;  %v390_v35 = vpop.permute.xlu0 %389  ;;  %v405_v30 = vpop.permute.xlu1 %404  ;;  %vm482_vm13 = vcmp.lt.s32.totalorder %v989_v31, %v1041_v38 }
 0x186   :  { %vm1128_vm5 = vmor %vm449_vm0, %vm497_vm3  ;;  %805 = vmatprep.subr.bf16.mxu0 %v855_v9  ;;  %vm463_vm8 = vcmp.eq.f32.partialorder %v390_v35, %v1079_v17  ;;  %vm447_vm12 = vcmp.gt.f32.partialorder %v390_v35, %v1079_v17  ;;  %vm466_vm14 = vcmp.eq.f32.partialorder %v405_v30, %v1079_v17  ;;  %vm450_vm1 = vcmp.gt.f32.partialorder %v405_v30, %v1079_v17 }
 0x187   :  { %vm500_vm6 = vmand %vm468_vm9, %vm484_vm2 }
 0x188   :  { %vm516_vm10 = vmor %vm452_vm4, %vm500_vm6 }
 0x189   :  { %vm703_vm7 = vmpackc.low %vm516_vm10, %vm1112_vm11  ;;  %v380_v33 = vpop.permute.xlu0 %379  ;;  %v395_v40 = vpop.permute.xlu1 %394  ;;  %vm477_vm11 = vcmp.lt.s32.totalorder %v957_v24, %v1041_v38 }
 0x18a   :  { %vm495_vm0 = vmand %vm463_vm8, %vm479_vm15  ;;  %806 = vmatpush3.bf16.msk.msra.mxu0 %vm703_vm7, %v856_v13  ;;  %vm461_vm3 = vcmp.eq.f32.partialorder %v380_v33, %v1079_v17  ;;  %vm445_vm6 = vcmp.gt.f32.partialorder %v380_v33, %v1079_v17  ;;  %vm480_vm8 = vcmp.lt.s32.totalorder %v983_v29, %v1041_v38  ;;  %vm464_vm10 = vcmp.eq.f32.partialorder %v395_v40, %v1079_v17 }
 0x18b   :  { %vm1144_vm2 = vmor %vm447_vm12, %vm495_vm0  ;;  %807 = vmatprep.subr.bf16.mxu0 %v855_v9  ;;  %vm448_vm7 = vcmp.gt.f32.partialorder %v395_v40, %v1079_v17 }
 0x18c   :  { %vm498_vm9 = vmand %vm466_vm14, %vm482_vm13 }
 0x18d   :  { %vm514_vm4 = vmor %vm450_vm1, %vm498_vm9  ;;  %v370_v31 = vpop.permute.xlu0 %369  ;;  %v385_v41 = vpop.permute.xlu1 %384 }
 0x18e   :  { %vm705_vm15 = vmpackc.low %vm514_vm4, %vm1128_vm5  ;;  %vm475_vm5 = vcmp.lt.s32.totalorder %v944_v20, %v1041_v38  ;;  %vm459_vm0 = vcmp.eq.f32.partialorder %v370_v31, %v1079_v17  ;;  %vm443_vm9 = vcmp.gt.f32.partialorder %v370_v31, %v1079_v17  ;;  %vm462_vm4 = vcmp.eq.f32.partialorder %v385_v41, %v1079_v17 }
 0x18f   :  { %vm493_vm12 = vmand %vm461_vm3, %vm477_vm11  ;;  %808 = vmatpush3.bf16.msk.msra.mxu0 %vm705_vm15, %v856_v13  ;;  %vm478_vm3 = vcmp.lt.s32.totalorder %v960_v25, %v1041_v38  ;;  %vm446_vm15 = vcmp.gt.f32.partialorder %v385_v41, %v1079_v17 }
 0x190   :  { %vm1160_vm13 = vmor %vm445_vm6, %vm493_vm12  ;;  %809 = vmatprep.subr.bf16.mxu0 %v855_v9 }
 0x191   :  { %vm496_vm14 = vmand %vm464_vm10, %vm480_vm8  ;;  %v375_v29 = vpop.permute.xlu1 %374  ;;  %v360_v42 = vpop.permute.xlu0 %359 }
 0x192   :  { %vm512_vm1 = vmor %vm448_vm7, %vm496_vm14  ;;  %vm457_vm12 = vcmp.eq.f32.partialorder %v360_v42, %v1079_v17  ;;  %vm441_vm14 = vcmp.gt.f32.partialorder %v360_v42, %v1079_v17 }
 0x193   :  { %vm707_vm11 = vmpackc.low %vm512_vm1, %vm1144_vm2  ;;  %vm473_vm2 = vcmp.lt.s32.totalorder %v887_v5, %v1041_v38  ;;  %vm460_vm1 = vcmp.eq.f32.partialorder %v375_v29, %v1079_v17 }
 0x194   :  { %vm491_vm6 = vmand %vm459_vm0, %vm475_vm5  ;;  %810 = vmatpush3.bf16.msk.msra.mxu0 %vm707_vm11, %v856_v13  ;;  %vm476_vm0 = vcmp.lt.s32.totalorder %v947_v21, %v1041_v38  ;;  %vm444_vm11 = vcmp.gt.f32.partialorder %v375_v29, %v1079_v17 }
 0x195   :  { %vm1176_vm8 = vmor %vm443_vm9, %vm491_vm6  ;;  %811 = vmatprep.subr.bf16.mxu0 %v855_v9  ;;  %v365_v25 = vpop.permute.xlu1 %364  ;;  %vm474_vm6 = vcmp.lt.s32.totalorder %v897_v8, %v1041_v38 }
 0x196   :  { %vm494_vm10 = vmand %vm462_vm4, %vm478_vm3 }
 0x197   :  { %vm510_vm7 = vmor %vm446_vm15, %vm494_vm10  ;;  %vm442_vm10 = vcmp.gt.f32.partialorder %v365_v25, %v1079_v17 }
 0x198   :  { %vm709_vm5 = vmpackc.low %vm510_vm7, %vm1160_vm13  ;;  %vm458_vm13 = vcmp.eq.f32.partialorder %v365_v25, %v1079_v17 }
 0x199   :  { %vm489_vm9 = vmand %vm457_vm12, %vm473_vm2  ;;  %812 = vmatpush3.bf16.msk.msra.mxu0 %vm709_vm5, %v856_v13 }
 0x19a   :  { %vm505_vm3 = vmor %vm441_vm14, %vm489_vm9  ;;  %813 = vmatprep.subr.bf16.mxu0 %v855_v9 }
 0x19b   :  { %vm492_vm4 = vmand %vm460_vm1, %vm476_vm0 }
 0x19c   :  { %vm508_vm15 = vmor %vm444_vm11, %vm492_vm4 }
 0x19d   :  { %vm711_vm7 = vmpackc.low %vm508_vm15, %vm1176_vm8 }
 0x19e   :  { %vm490_vm2 = vmand %vm458_vm13, %vm474_vm6  ;;  %814 = vmatpush3.bf16.msk.msra.mxu0 %vm711_vm7, %v856_v13 }
 0x19f   :  { %vm506_vm12 = vmor %vm442_vm10, %vm490_vm2  ;;  %815 = vmatprep.subr.bf16.mxu0 %v855_v9 }
 0x1a0   :  { %vm713_vm14 = vmpackc.low %vm506_vm12, %vm505_vm3 }
 0x1a2   :  { %816 = vmatpush3.bf16.msk.msra.mxu0 %vm713_vm14, %v856_v13 }
 0x1a5   :  { %818 = vmatmul.mubr.bf16.vlgmr.msra.gmra.mxu0 %v853_v3 }
 0x265   :  { %v595_v5 = vpop.f32.mrf.mxu0 }
 0x266   :  { %v596_v8 = vadd.f32 1.0, %v595_v5 }
 0x267   :  { %v819_v21 = vpop.f32.mrf.mxu0 }
 0x268   :  { %829 = vrcp.f32 %v596_v8 }
 0x269   :  { %v598_v38 = vpop.f32.mrf.mxu0 }
 0x26b   :  { %v820_v43 = vpop.f32.mrf.mxu0 }
 0x275   :  { %v830_v44 = vpop.eup %829 }
 0x276   :  { %602 = vst [vmem:[#allocation2] sm:$0x1] %v830_v44 }
 0x277   :  { %842 = shalt.err (!%p839_p4)
}
 0x278   :  { %612 = dma.vmem_to_hbm [thread:$0]  %s610_s19, 16, %s1209_s3, [#allocation3]  }
 0x279   :  { %851 = dma.done.wait [#allocation3], 16  }
 0x27a   :  { %852 = vsyncadd [#allocation3], 4294967280 }
 0x27b   :  { %616 = vsyncpa [#allocation3], 1 }

</bundles_post_ra>
